<compile_context>
chip_gen: v7x
topology: tpu7x:2x2x1
jax: 0.10.0
libtpu: 0.0.40
codegen_flags: <defaults>
</compile_context>

<pallas_src>
import functools

import jax
import jax.numpy as jnp
from jax.experimental import pallas as pl
from jax.experimental.pallas import tpu as pltpu


# ----------------------------- config (small, synthetic) -----------------------------
VOCAB_SIZE = 50
EMBED_DIM = 32          # E
OUT_CHANNELS = 8        # C
KERNEL_SIZES = (2, 3, 4)
MAX_LEN = 16            # L
NUM_CLASS = 4
BATCH = 2
# TODO(synk): dropout is treated as identity (inference mode), matching nn.Dropout.eval().


# ----------------------------------- Pallas kernel -----------------------------------
def _textcnn_kernel(ids_ref,     # [B*L]            i32 (SMEM, scalar-prefetched) token ids
                    emb_ref,     # [VOCAB, E]       f32 embedding table (VMEM resident)
                    wcat_ref,    # [KMAX*E, 3C]     dot_dtype fused (zero-padded) conv weights
                    bm_ref,      # [L, 3C]          f32 bias + (-1e30 on invalid time rows)
                    fcwb_ref,    # [3C+1, NUM_CLASS] dot_dtype fc weight^T with bias row appended
                    *rest,       # [attack_ref], o_ref, x_scr
                    B, L, KMAX, C3, dot_dtype, has_attack):
    if has_attack:
        attack_ref, o_ref, x_scr = rest
    else:
        o_ref, x_scr = rest
    N = B * L
    E = emb_ref.shape[1]

    # ---- fused embedding gather: SMEM scalar ids index dynamic rows of the VMEM table ----
    for r in range(N):                                        # N=32 static, unrolled row copies
        x_scr[pl.ds(r, 1), :] = emb_ref[pl.ds(ids_ref[r], 1), :]
    x = x_scr[...]                                            # [B*L, E] f32
    if has_attack:
        x = x + attack_ref[...]

    # ---- im2col at full (sublane-aligned) length via XLU rotations ------------------------
    # parts[i][r, :] = x[(r + i) mod N, :]; wrapped rows are finite garbage that lands only
    # on time rows l >= L-k+1, which the -1e30 penalty in bm kills before the max.
    parts = [x] + [pltpu.roll(x, N - i, 0) for i in range(1, KMAX)]
    xcat = jnp.concatenate(parts, axis=-1).astype(dot_dtype)  # [B*L, KMAX*E]  (KMAX*E = 128)

    # ---- all three conv branches as ONE MXU matmul (contraction depth = 128) --------------
    h = jnp.dot(xcat, wcat_ref[...],
                preferred_element_type=jnp.float32)           # [B*L, 3C] f32

    # bias + time-validity penalty in a single add, then ReLU.
    # NOTE: relies on ReLU(>=0): penalized rows become exactly 0 and can never win the max.
    h3 = jnp.maximum(h.reshape(B, L, C3) + bm_ref[...], 0.0)  # [B, L, 3C]

    # ---- MaxPool over time, all batches in one vectorized reduction -----------------------
    pooled = jnp.max(h3, axis=1)                              # [B, 3C] == torch.cat order

    # ---- single FC matmul, bias folded in via ones-column augmentation --------------------
    ones = jnp.ones((B, 1), dtype=jnp.float32)
    pooled_aug = jnp.concatenate([pooled, ones], axis=-1).astype(dot_dtype)   # [B, 3C+1]
    o_ref[...] = jnp.dot(pooled_aug, fcwb_ref[...],
                         preferred_element_type=jnp.float32)  # [B, NUM_CLASS] f32


# ------------------------- one-time parameter / layout preparation --------------------
def prepare_params(params, dot_dtype=jnp.bfloat16):
    """Hoisted layout work: pack conv weights into one im2col matrix, fold conv bias and
    per-branch time-validity into one additive slab, append fc bias to fc weight.
    bf16 MXU operands (f32 accumulation) are the default fast path on v5e/v6e/v7x."""
    C, E, L = OUT_CHANNELS, EMBED_DIM, MAX_LEN
    kmax = max(KERNEL_SIZES)
    c3 = C * len(KERNEL_SIZES)

    # Alignment invariants the kernel relies on (sublane-aligned reshape / 128-deep dot).
    assert L % 8 == 0, "MAX_LEN must be a multiple of 8 (sublane alignment of per-batch rows)"
    assert kmax * E == 128, "KMAX*EMBED_DIM must equal 128 (im2col contraction depth)"

    wcat = jnp.zeros((kmax * E, c3), jnp.float32)
    bm = jnp.full((L, c3), -1e30, jnp.float32)
    l_ids = jnp.arange(L)[:, None]
    for idx, k in enumerate(KERNEL_SIZES):
        # torch conv weight [C, 1, k, E] -> [k, E, C] -> rows i*E+e of the fused matrix.
        w = jnp.transpose(params[f'conv{idx}_w'][:, 0, :, :], (1, 2, 0))   # [k, E, C]
        wcat = wcat.at[:k * E, idx * C:(idx + 1) * C].set(w.reshape(k * E, C))
        valid = l_ids < (L - k + 1)                                        # Lout_k = L-k+1
        col = jnp.where(valid, params[f'conv{idx}_b'][None, :], -1e30)     # [L, C]
        bm = bm.at[:, idx * C:(idx + 1) * C].set(col)

    fcwb = jnp.concatenate(
        [params['fc_w'].T, params['fc_b'].reshape(1, NUM_CLASS)], axis=0)  # [3C+1, NUM_CLASS]

    return {
        'embedding': params['embedding'].astype(jnp.float32),
        'wcat': wcat.astype(dot_dtype),
        'bm': bm,
        'fcwb': fcwb.astype(dot_dtype),
    }


def textcnn_forward(prepped, input_ids, attack=None):
    """Single fused pallas_call (gather + conv + ReLU + maxpool + FC). Jit this."""
    B, L = input_ids.shape
    N = B * L
    C3 = OUT_CHANNELS * len(KERNEL_SIZES)
    ids = input_ids.reshape(N).astype(jnp.int32)
    has_attack = attack is not None

    kernel = functools.partial(
        _textcnn_kernel, B=B, L=L, KMAX=max(KERNEL_SIZES), C3=C3,
        dot_dtype=prepped['wcat'].dtype, has_attack=has_attack)

    operands = [prepped['embedding'], prepped['wcat'], prepped['bm'], prepped['fcwb']]
    in_specs = [pl.BlockSpec(memory_space=pltpu.MemorySpace.VMEM)] * 4
    if has_attack:
        operands.append(attack.reshape(N, EMBED_DIM).astype(jnp.float32))
        in_specs.append(pl.BlockSpec(memory_space=pltpu.MemorySpace.VMEM))

    grid_spec = pltpu.PrefetchScalarGridSpec(
        num_scalar_prefetch=1,                         # ids -> SMEM, available in-kernel
        grid=(1,),
        in_specs=in_specs,
        out_specs=pl.BlockSpec(memory_space=pltpu.MemorySpace.VMEM),
        scratch_shapes=[pltpu.VMEM((N, EMBED_DIM), jnp.float32)],   # gathered embeddings
    )

    return pl.pallas_call(
        kernel,
        out_shape=jax.ShapeDtypeStruct((B, NUM_CLASS), jnp.float32),
        grid_spec=grid_spec,
        compiler_params=pltpu.CompilerParams(dimension_semantics=("arbitrary",)),
    )(ids, *operands)


# ------------------------------- reference (plain JAX) -------------------------------
def textcnn_reference(params, input_ids, attack=None):
    x = jnp.take(params['embedding'], input_ids, axis=0)
    if attack is not None:
        x = x + attack
    x = x.astype(jnp.float32)
    B, L, E = x.shape
    C = OUT_CHANNELS
    feats = []
    for i, k in enumerate(KERNEL_SIZES):
        w = params[f'conv{i}_w'][:, 0, :, :]              # [C, k, E]
        b = params[f'conv{i}_b']                          # [C]
        Lout = L - k + 1
        acc = jnp.zeros((B, Lout, C), jnp.float32)
        for j in range(k):
            acc = acc + jnp.einsum('ble,ce->blc', x[:, j:j + Lout, :], w[:, j, :])
        acc = jnp.maximum(acc + b[None, None, :], 0.0)
        feats.append(jnp.max(acc, axis=1))
    feat = jnp.concatenate(feats, axis=-1)                # [B, 3C]
    return feat @ params['fc_w'].T + params['fc_b'][None, :]


# -------------------------------------- main ------------------------------------------
def init_params(key):
    keys = jax.random.split(key, 2 + 2 * len(KERNEL_SIZES) + 2)
    params = {}
    params['embedding'] = 0.1 * jax.random.normal(keys[0], (VOCAB_SIZE, EMBED_DIM), jnp.float32)
    for i, k in enumerate(KERNEL_SIZES):
        params[f'conv{i}_w'] = 0.1 * jax.random.normal(
            keys[1 + 2 * i], (OUT_CHANNELS, 1, k, EMBED_DIM), jnp.float32)
        params[f'conv{i}_b'] = 0.1 * jax.random.normal(
            keys[2 + 2 * i], (OUT_CHANNELS,), jnp.float32)
    params['fc_w'] = 0.1 * jax.random.normal(
        keys[-2], (NUM_CLASS, 3 * OUT_CHANNELS), jnp.float32)
    params['fc_b'] = 0.1 * jax.random.normal(keys[-1], (NUM_CLASS,), jnp.float32)
    return params


if __name__ == "__main__":
    key = jax.random.PRNGKey(0)
    pkey, dkey, akey = jax.random.split(key, 3)
    params = init_params(pkey)
    input_ids = jax.random.randint(dkey, (BATCH, MAX_LEN), 0, VOCAB_SIZE, dtype=jnp.int32)

    ref = jax.block_until_ready(textcnn_reference(params, input_ids))
    fwd = jax.jit(textcnn_forward)

    # bf16 MXU operands, f32 accumulation: the default fast path on v5e/v6e/v7x.
    prepped = prepare_params(params)                       # dot_dtype=bf16 by default
    out = jax.block_until_ready(fwd(prepped, input_ids))
    assert out.shape == (BATCH, NUM_CLASS)
    assert jnp.allclose(out, ref, atol=2e-2, rtol=2e-2), (out, ref)

    # f32 matmul operands: strict numerical check.
    prepped_f32 = prepare_params(params, dot_dtype=jnp.float32)
    out_f32 = jax.block_until_ready(fwd(prepped_f32, input_ids))
    assert jnp.allclose(out_f32, ref, atol=1e-4, rtol=1e-4), (out_f32, ref)

    # attack path (adversarial perturbation added to embeddings), strict f32 check.
    attack = 0.05 * jax.random.normal(akey, (BATCH, MAX_LEN, EMBED_DIM), jnp.float32)
    ref_atk = jax.block_until_ready(textcnn_reference(params, input_ids, attack))
    out_atk = jax.block_until_ready(fwd(prepped_f32, input_ids, attack))
    assert jnp.allclose(out_atk, ref_atk, atol=1e-4, rtol=1e-4), (out_atk, ref_atk)

    print("KERNEL_OK")
</pallas_src>

<mosaic_0001>
module attributes {stable_mosaic.version = 11 : i64} {
  func.func @_textcnn_kernel(%arg0: i32, %arg1: memref<32xi32, #tpu.memory_space<smem>>, %arg2: memref<50x32xf32, #tpu.memory_space<vmem>>, %arg3: memref<128x24xbf16, #tpu.memory_space<vmem>>, %arg4: memref<16x24xf32, #tpu.memory_space<vmem>>, %arg5: memref<25x4xbf16, #tpu.memory_space<vmem>>, %arg6: memref<2x4xf32, #tpu.memory_space<vmem>>, %arg7: memref<32x32xf32, #tpu.memory_space<vmem>>) attributes {dimension_semantics = [#tpu.dimension_semantics<arbitrary>], iteration_bounds = array<i64: 1>, scalar_prefetch = 1 : i64, scratch_operands = 1 : i64, tpu.core_type = #tpu.core_type<tc>, window_params = [{pipeline_mode = #tpu.pipeline_mode<synchronous>, transform_indices = @transform_0, window_bounds = array<i64: 50, 32>}, {pipeline_mode = #tpu.pipeline_mode<synchronous>, transform_indices = @transform_1, window_bounds = array<i64: 128, 24>}, {pipeline_mode = #tpu.pipeline_mode<synchronous>, transform_indices = @transform_2, window_bounds = array<i64: 16, 24>}, {pipeline_mode = #tpu.pipeline_mode<synchronous>, transform_indices = @transform_3, window_bounds = array<i64: 25, 4>}, {pipeline_mode = #tpu.pipeline_mode<synchronous>, transform_indices = @transform_4, window_bounds = array<i64: 2, 4>}]} {
    %c0 = arith.constant 0 : index
    %0 = memref.load %arg1[%c0] : memref<32xi32, #tpu.memory_space<smem>>
    %1 = arith.index_cast %0 : i32 to index
    %c0_0 = arith.constant 0 : index
    %2 = vector.load %arg2[%1, %c0_0] : memref<50x32xf32, #tpu.memory_space<vmem>>, vector<1x32xf32>
    %c0_1 = arith.constant 0 : index
    %c0_2 = arith.constant 0 : index
    %3 = vector.load %arg7[%c0_1, %c0_2] : memref<32x32xf32, #tpu.memory_space<vmem>>, vector<1x32xf32>
    tpu.vector_store %arg7[%c0_1, %c0_2], %2 {strides = array<i32>} : memref<32x32xf32, #tpu.memory_space<vmem>>, vector<1x32xf32>,
    %c1 = arith.constant 1 : index
    %4 = memref.load %arg1[%c1] : memref<32xi32, #tpu.memory_space<smem>>
    %5 = arith.index_cast %4 : i32 to index
    %c0_3 = arith.constant 0 : index
    %6 = vector.load %arg2[%5, %c0_3] : memref<50x32xf32, #tpu.memory_space<vmem>>, vector<1x32xf32>
    %c1_4 = arith.constant 1 : index
    %c0_5 = arith.constant 0 : index
    %7 = vector.load %arg7[%c1_4, %c0_5] : memref<32x32xf32, #tpu.memory_space<vmem>>, vector<1x32xf32>
    tpu.vector_store %arg7[%c1_4, %c0_5], %6 {strides = array<i32>} : memref<32x32xf32, #tpu.memory_space<vmem>>, vector<1x32xf32>,
    %c2 = arith.constant 2 : index
    %8 = memref.load %arg1[%c2] : memref<32xi32, #tpu.memory_space<smem>>
    %9 = arith.index_cast %8 : i32 to index
    %c0_6 = arith.constant 0 : index
    %10 = vector.load %arg2[%9, %c0_6] : memref<50x32xf32, #tpu.memory_space<vmem>>, vector<1x32xf32>
    %c2_7 = arith.constant 2 : index
    %c0_8 = arith.constant 0 : index
    %11 = vector.load %arg7[%c2_7, %c0_8] : memref<32x32xf32, #tpu.memory_space<vmem>>, vector<1x32xf32>
    tpu.vector_store %arg7[%c2_7, %c0_8], %10 {strides = array<i32>} : memref<32x32xf32, #tpu.memory_space<vmem>>, vector<1x32xf32>,
    %c3 = arith.constant 3 : index
    %12 = memref.load %arg1[%c3] : memref<32xi32, #tpu.memory_space<smem>>
    %13 = arith.index_cast %12 : i32 to index
    %c0_9 = arith.constant 0 : index
    %14 = vector.load %arg2[%13, %c0_9] : memref<50x32xf32, #tpu.memory_space<vmem>>, vector<1x32xf32>
    %c3_10 = arith.constant 3 : index
    %c0_11 = arith.constant 0 : index
    %15 = vector.load %arg7[%c3_10, %c0_11] : memref<32x32xf32, #tpu.memory_space<vmem>>, vector<1x32xf32>
    tpu.vector_store %arg7[%c3_10, %c0_11], %14 {strides = array<i32>} : memref<32x32xf32, #tpu.memory_space<vmem>>, vector<1x32xf32>,
    %c4 = arith.constant 4 : index
    %16 = memref.load %arg1[%c4] : memref<32xi32, #tpu.memory_space<smem>>
    %17 = arith.index_cast %16 : i32 to index
    %c0_12 = arith.constant 0 : index
    %18 = vector.load %arg2[%17, %c0_12] : memref<50x32xf32, #tpu.memory_space<vmem>>, vector<1x32xf32>
    %c4_13 = arith.constant 4 : index
    %c0_14 = arith.constant 0 : index
    %19 = vector.load %arg7[%c4_13, %c0_14] : memref<32x32xf32, #tpu.memory_space<vmem>>, vector<1x32xf32>
    tpu.vector_store %arg7[%c4_13, %c0_14], %18 {strides = array<i32>} : memref<32x32xf32, #tpu.memory_space<vmem>>, vector<1x32xf32>,
    %c5 = arith.constant 5 : index
    %20 = memref.load %arg1[%c5] : memref<32xi32, #tpu.memory_space<smem>>
    %21 = arith.index_cast %20 : i32 to index
    %c0_15 = arith.constant 0 : index
    %22 = vector.load %arg2[%21, %c0_15] : memref<50x32xf32, #tpu.memory_space<vmem>>, vector<1x32xf32>
    %c5_16 = arith.constant 5 : index
    %c0_17 = arith.constant 0 : index
    %23 = vector.load %arg7[%c5_16, %c0_17] : memref<32x32xf32, #tpu.memory_space<vmem>>, vector<1x32xf32>
    tpu.vector_store %arg7[%c5_16, %c0_17], %22 {strides = array<i32>} : memref<32x32xf32, #tpu.memory_space<vmem>>, vector<1x32xf32>,
    %c6 = arith.constant 6 : index
    %24 = memref.load %arg1[%c6] : memref<32xi32, #tpu.memory_space<smem>>
    %25 = arith.index_cast %24 : i32 to index
    %c0_18 = arith.constant 0 : index
    %26 = vector.load %arg2[%25, %c0_18] : memref<50x32xf32, #tpu.memory_space<vmem>>, vector<1x32xf32>
    %c6_19 = arith.constant 6 : index
    %c0_20 = arith.constant 0 : index
    %27 = vector.load %arg7[%c6_19, %c0_20] : memref<32x32xf32, #tpu.memory_space<vmem>>, vector<1x32xf32>
    tpu.vector_store %arg7[%c6_19, %c0_20], %26 {strides = array<i32>} : memref<32x32xf32, #tpu.memory_space<vmem>>, vector<1x32xf32>,
    %c7 = arith.constant 7 : index
    %28 = memref.load %arg1[%c7] : memref<32xi32, #tpu.memory_space<smem>>
    %29 = arith.index_cast %28 : i32 to index
    %c0_21 = arith.constant 0 : index
    %30 = vector.load %arg2[%29, %c0_21] : memref<50x32xf32, #tpu.memory_space<vmem>>, vector<1x32xf32>
    %c7_22 = arith.constant 7 : index
    %c0_23 = arith.constant 0 : index
    %31 = vector.load %arg7[%c7_22, %c0_23] : memref<32x32xf32, #tpu.memory_space<vmem>>, vector<1x32xf32>
    tpu.vector_store %arg7[%c7_22, %c0_23], %30 {strides = array<i32>} : memref<32x32xf32, #tpu.memory_space<vmem>>, vector<1x32xf32>,
    %c8 = arith.constant 8 : index
    %32 = memref.load %arg1[%c8] : memref<32xi32, #tpu.memory_space<smem>>
    %33 = arith.index_cast %32 : i32 to index
    %c0_24 = arith.constant 0 : index
    %34 = vector.load %arg2[%33, %c0_24] : memref<50x32xf32, #tpu.memory_space<vmem>>, vector<1x32xf32>
    %c8_25 = arith.constant 8 : index
    %c0_26 = arith.constant 0 : index
    %35 = vector.load %arg7[%c8_25, %c0_26] : memref<32x32xf32, #tpu.memory_space<vmem>>, vector<1x32xf32>
    tpu.vector_store %arg7[%c8_25, %c0_26], %34 {strides = array<i32>} : memref<32x32xf32, #tpu.memory_space<vmem>>, vector<1x32xf32>,
    %c9 = arith.constant 9 : index
    %36 = memref.load %arg1[%c9] : memref<32xi32, #tpu.memory_space<smem>>
    %37 = arith.index_cast %36 : i32 to index
    %c0_27 = arith.constant 0 : index
    %38 = vector.load %arg2[%37, %c0_27] : memref<50x32xf32, #tpu.memory_space<vmem>>, vector<1x32xf32>
    %c9_28 = arith.constant 9 : index
    %c0_29 = arith.constant 0 : index
    %39 = vector.load %arg7[%c9_28, %c0_29] : memref<32x32xf32, #tpu.memory_space<vmem>>, vector<1x32xf32>
    tpu.vector_store %arg7[%c9_28, %c0_29], %38 {strides = array<i32>} : memref<32x32xf32, #tpu.memory_space<vmem>>, vector<1x32xf32>,
    %c10 = arith.constant 10 : index
    %40 = memref.load %arg1[%c10] : memref<32xi32, #tpu.memory_space<smem>>
    %41 = arith.index_cast %40 : i32 to index
    %c0_30 = arith.constant 0 : index
    %42 = vector.load %arg2[%41, %c0_30] : memref<50x32xf32, #tpu.memory_space<vmem>>, vector<1x32xf32>
    %c10_31 = arith.constant 10 : index
    %c0_32 = arith.constant 0 : index
    %43 = vector.load %arg7[%c10_31, %c0_32] : memref<32x32xf32, #tpu.memory_space<vmem>>, vector<1x32xf32>
    tpu.vector_store %arg7[%c10_31, %c0_32], %42 {strides = array<i32>} : memref<32x32xf32, #tpu.memory_space<vmem>>, vector<1x32xf32>,
    %c11 = arith.constant 11 : index
    %44 = memref.load %arg1[%c11] : memref<32xi32, #tpu.memory_space<smem>>
    %45 = arith.index_cast %44 : i32 to index
    %c0_33 = arith.constant 0 : index
    %46 = vector.load %arg2[%45, %c0_33] : memref<50x32xf32, #tpu.memory_space<vmem>>, vector<1x32xf32>
    %c11_34 = arith.constant 11 : index
    %c0_35 = arith.constant 0 : index
    %47 = vector.load %arg7[%c11_34, %c0_35] : memref<32x32xf32, #tpu.memory_space<vmem>>, vector<1x32xf32>
    tpu.vector_store %arg7[%c11_34, %c0_35], %46 {strides = array<i32>} : memref<32x32xf32, #tpu.memory_space<vmem>>, vector<1x32xf32>,
    %c12 = arith.constant 12 : index
    %48 = memref.load %arg1[%c12] : memref<32xi32, #tpu.memory_space<smem>>
    %49 = arith.index_cast %48 : i32 to index
    %c0_36 = arith.constant 0 : index
    %50 = vector.load %arg2[%49, %c0_36] : memref<50x32xf32, #tpu.memory_space<vmem>>, vector<1x32xf32>
    %c12_37 = arith.constant 12 : index
    %c0_38 = arith.constant 0 : index
    %51 = vector.load %arg7[%c12_37, %c0_38] : memref<32x32xf32, #tpu.memory_space<vmem>>, vector<1x32xf32>
    tpu.vector_store %arg7[%c12_37, %c0_38], %50 {strides = array<i32>} : memref<32x32xf32, #tpu.memory_space<vmem>>, vector<1x32xf32>,
    %c13 = arith.constant 13 : index
    %52 = memref.load %arg1[%c13] : memref<32xi32, #tpu.memory_space<smem>>
    %53 = arith.index_cast %52 : i32 to index
    %c0_39 = arith.constant 0 : index
    %54 = vector.load %arg2[%53, %c0_39] : memref<50x32xf32, #tpu.memory_space<vmem>>, vector<1x32xf32>
    %c13_40 = arith.constant 13 : index
    %c0_41 = arith.constant 0 : index
    %55 = vector.load %arg7[%c13_40, %c0_41] : memref<32x32xf32, #tpu.memory_space<vmem>>, vector<1x32xf32>
    tpu.vector_store %arg7[%c13_40, %c0_41], %54 {strides = array<i32>} : memref<32x32xf32, #tpu.memory_space<vmem>>, vector<1x32xf32>,
    %c14 = arith.constant 14 : index
    %56 = memref.load %arg1[%c14] : memref<32xi32, #tpu.memory_space<smem>>
    %57 = arith.index_cast %56 : i32 to index
    %c0_42 = arith.constant 0 : index
    %58 = vector.load %arg2[%57, %c0_42] : memref<50x32xf32, #tpu.memory_space<vmem>>, vector<1x32xf32>
    %c14_43 = arith.constant 14 : index
    %c0_44 = arith.constant 0 : index
    %59 = vector.load %arg7[%c14_43, %c0_44] : memref<32x32xf32, #tpu.memory_space<vmem>>, vector<1x32xf32>
    tpu.vector_store %arg7[%c14_43, %c0_44], %58 {strides = array<i32>} : memref<32x32xf32, #tpu.memory_space<vmem>>, vector<1x32xf32>,
    %c15 = arith.constant 15 : index
    %60 = memref.load %arg1[%c15] : memref<32xi32, #tpu.memory_space<smem>>
    %61 = arith.index_cast %60 : i32 to index
    %c0_45 = arith.constant 0 : index
    %62 = vector.load %arg2[%61, %c0_45] : memref<50x32xf32, #tpu.memory_space<vmem>>, vector<1x32xf32>
    %c15_46 = arith.constant 15 : index
    %c0_47 = arith.constant 0 : index
    %63 = vector.load %arg7[%c15_46, %c0_47] : memref<32x32xf32, #tpu.memory_space<vmem>>, vector<1x32xf32>
    tpu.vector_store %arg7[%c15_46, %c0_47], %62 {strides = array<i32>} : memref<32x32xf32, #tpu.memory_space<vmem>>, vector<1x32xf32>,
    %c16 = arith.constant 16 : index
    %64 = memref.load %arg1[%c16] : memref<32xi32, #tpu.memory_space<smem>>
    %65 = arith.index_cast %64 : i32 to index
    %c0_48 = arith.constant 0 : index
    %66 = vector.load %arg2[%65, %c0_48] : memref<50x32xf32, #tpu.memory_space<vmem>>, vector<1x32xf32>
    %c16_49 = arith.constant 16 : index
    %c0_50 = arith.constant 0 : index
    %67 = vector.load %arg7[%c16_49, %c0_50] : memref<32x32xf32, #tpu.memory_space<vmem>>, vector<1x32xf32>
    tpu.vector_store %arg7[%c16_49, %c0_50], %66 {strides = array<i32>} : memref<32x32xf32, #tpu.memory_space<vmem>>, vector<1x32xf32>,
    %c17 = arith.constant 17 : index
    %68 = memref.load %arg1[%c17] : memref<32xi32, #tpu.memory_space<smem>>
    %69 = arith.index_cast %68 : i32 to index
    %c0_51 = arith.constant 0 : index
    %70 = vector.load %arg2[%69, %c0_51] : memref<50x32xf32, #tpu.memory_space<vmem>>, vector<1x32xf32>
    %c17_52 = arith.constant 17 : index
    %c0_53 = arith.constant 0 : index
    %71 = vector.load %arg7[%c17_52, %c0_53] : memref<32x32xf32, #tpu.memory_space<vmem>>, vector<1x32xf32>
    tpu.vector_store %arg7[%c17_52, %c0_53], %70 {strides = array<i32>} : memref<32x32xf32, #tpu.memory_space<vmem>>, vector<1x32xf32>,
    %c18 = arith.constant 18 : index
    %72 = memref.load %arg1[%c18] : memref<32xi32, #tpu.memory_space<smem>>
    %73 = arith.index_cast %72 : i32 to index
    %c0_54 = arith.constant 0 : index
    %74 = vector.load %arg2[%73, %c0_54] : memref<50x32xf32, #tpu.memory_space<vmem>>, vector<1x32xf32>
    %c18_55 = arith.constant 18 : index
    %c0_56 = arith.constant 0 : index
    %75 = vector.load %arg7[%c18_55, %c0_56] : memref<32x32xf32, #tpu.memory_space<vmem>>, vector<1x32xf32>
    tpu.vector_store %arg7[%c18_55, %c0_56], %74 {strides = array<i32>} : memref<32x32xf32, #tpu.memory_space<vmem>>, vector<1x32xf32>,
    %c19 = arith.constant 19 : index
    %76 = memref.load %arg1[%c19] : memref<32xi32, #tpu.memory_space<smem>>
    %77 = arith.index_cast %76 : i32 to index
    %c0_57 = arith.constant 0 : index
    %78 = vector.load %arg2[%77, %c0_57] : memref<50x32xf32, #tpu.memory_space<vmem>>, vector<1x32xf32>
    %c19_58 = arith.constant 19 : index
    %c0_59 = arith.constant 0 : index
    %79 = vector.load %arg7[%c19_58, %c0_59] : memref<32x32xf32, #tpu.memory_space<vmem>>, vector<1x32xf32>
    tpu.vector_store %arg7[%c19_58, %c0_59], %78 {strides = array<i32>} : memref<32x32xf32, #tpu.memory_space<vmem>>, vector<1x32xf32>,
    %c20 = arith.constant 20 : index
    %80 = memref.load %arg1[%c20] : memref<32xi32, #tpu.memory_space<smem>>
    %81 = arith.index_cast %80 : i32 to index
    %c0_60 = arith.constant 0 : index
    %82 = vector.load %arg2[%81, %c0_60] : memref<50x32xf32, #tpu.memory_space<vmem>>, vector<1x32xf32>
    %c20_61 = arith.constant 20 : index
    %c0_62 = arith.constant 0 : index
    %83 = vector.load %arg7[%c20_61, %c0_62] : memref<32x32xf32, #tpu.memory_space<vmem>>, vector<1x32xf32>
    tpu.vector_store %arg7[%c20_61, %c0_62], %82 {strides = array<i32>} : memref<32x32xf32, #tpu.memory_space<vmem>>, vector<1x32xf32>,
    %c21 = arith.constant 21 : index
    %84 = memref.load %arg1[%c21] : memref<32xi32, #tpu.memory_space<smem>>
    %85 = arith.index_cast %84 : i32 to index
    %c0_63 = arith.constant 0 : index
    %86 = vector.load %arg2[%85, %c0_63] : memref<50x32xf32, #tpu.memory_space<vmem>>, vector<1x32xf32>
    %c21_64 = arith.constant 21 : index
    %c0_65 = arith.constant 0 : index
    %87 = vector.load %arg7[%c21_64, %c0_65] : memref<32x32xf32, #tpu.memory_space<vmem>>, vector<1x32xf32>
    tpu.vector_store %arg7[%c21_64, %c0_65], %86 {strides = array<i32>} : memref<32x32xf32, #tpu.memory_space<vmem>>, vector<1x32xf32>,
    %c22 = arith.constant 22 : index
    %88 = memref.load %arg1[%c22] : memref<32xi32, #tpu.memory_space<smem>>
    %89 = arith.index_cast %88 : i32 to index
    %c0_66 = arith.constant 0 : index
    %90 = vector.load %arg2[%89, %c0_66] : memref<50x32xf32, #tpu.memory_space<vmem>>, vector<1x32xf32>
    %c22_67 = arith.constant 22 : index
    %c0_68 = arith.constant 0 : index
    %91 = vector.load %arg7[%c22_67, %c0_68] : memref<32x32xf32, #tpu.memory_space<vmem>>, vector<1x32xf32>
    tpu.vector_store %arg7[%c22_67, %c0_68], %90 {strides = array<i32>} : memref<32x32xf32, #tpu.memory_space<vmem>>, vector<1x32xf32>,
    %c23 = arith.constant 23 : index
    %92 = memref.load %arg1[%c23] : memref<32xi32, #tpu.memory_space<smem>>
    %93 = arith.index_cast %92 : i32 to index
    %c0_69 = arith.constant 0 : index
    %94 = vector.load %arg2[%93, %c0_69] : memref<50x32xf32, #tpu.memory_space<vmem>>, vector<1x32xf32>
    %c23_70 = arith.constant 23 : index
    %c0_71 = arith.constant 0 : index
    %95 = vector.load %arg7[%c23_70, %c0_71] : memref<32x32xf32, #tpu.memory_space<vmem>>, vector<1x32xf32>
    tpu.vector_store %arg7[%c23_70, %c0_71], %94 {strides = array<i32>} : memref<32x32xf32, #tpu.memory_space<vmem>>, vector<1x32xf32>,
    %c24 = arith.constant 24 : index
    %96 = memref.load %arg1[%c24] : memref<32xi32, #tpu.memory_space<smem>>
    %97 = arith.index_cast %96 : i32 to index
    %c0_72 = arith.constant 0 : index
    %98 = vector.load %arg2[%97, %c0_72] : memref<50x32xf32, #tpu.memory_space<vmem>>, vector<1x32xf32>
    %c24_73 = arith.constant 24 : index
    %c0_74 = arith.constant 0 : index
    %99 = vector.load %arg7[%c24_73, %c0_74] : memref<32x32xf32, #tpu.memory_space<vmem>>, vector<1x32xf32>
    tpu.vector_store %arg7[%c24_73, %c0_74], %98 {strides = array<i32>} : memref<32x32xf32, #tpu.memory_space<vmem>>, vector<1x32xf32>,
    %c25 = arith.constant 25 : index
    %100 = memref.load %arg1[%c25] : memref<32xi32, #tpu.memory_space<smem>>
    %101 = arith.index_cast %100 : i32 to index
    %c0_75 = arith.constant 0 : index
    %102 = vector.load %arg2[%101, %c0_75] : memref<50x32xf32, #tpu.memory_space<vmem>>, vector<1x32xf32>
    %c25_76 = arith.constant 25 : index
    %c0_77 = arith.constant 0 : index
    %103 = vector.load %arg7[%c25_76, %c0_77] : memref<32x32xf32, #tpu.memory_space<vmem>>, vector<1x32xf32>
    tpu.vector_store %arg7[%c25_76, %c0_77], %102 {strides = array<i32>} : memref<32x32xf32, #tpu.memory_space<vmem>>, vector<1x32xf32>,
    %c26 = arith.constant 26 : index
    %104 = memref.load %arg1[%c26] : memref<32xi32, #tpu.memory_space<smem>>
    %105 = arith.index_cast %104 : i32 to index
    %c0_78 = arith.constant 0 : index
    %106 = vector.load %arg2[%105, %c0_78] : memref<50x32xf32, #tpu.memory_space<vmem>>, vector<1x32xf32>
    %c26_79 = arith.constant 26 : index
    %c0_80 = arith.constant 0 : index
    %107 = vector.load %arg7[%c26_79, %c0_80] : memref<32x32xf32, #tpu.memory_space<vmem>>, vector<1x32xf32>
    tpu.vector_store %arg7[%c26_79, %c0_80], %106 {strides = array<i32>} : memref<32x32xf32, #tpu.memory_space<vmem>>, vector<1x32xf32>,
    %c27 = arith.constant 27 : index
    %108 = memref.load %arg1[%c27] : memref<32xi32, #tpu.memory_space<smem>>
    %109 = arith.index_cast %108 : i32 to index
    %c0_81 = arith.constant 0 : index
    %110 = vector.load %arg2[%109, %c0_81] : memref<50x32xf32, #tpu.memory_space<vmem>>, vector<1x32xf32>
    %c27_82 = arith.constant 27 : index
    %c0_83 = arith.constant 0 : index
    %111 = vector.load %arg7[%c27_82, %c0_83] : memref<32x32xf32, #tpu.memory_space<vmem>>, vector<1x32xf32>
    tpu.vector_store %arg7[%c27_82, %c0_83], %110 {strides = array<i32>} : memref<32x32xf32, #tpu.memory_space<vmem>>, vector<1x32xf32>,
    %c28 = arith.constant 28 : index
    %112 = memref.load %arg1[%c28] : memref<32xi32, #tpu.memory_space<smem>>
    %113 = arith.index_cast %112 : i32 to index
    %c0_84 = arith.constant 0 : index
    %114 = vector.load %arg2[%113, %c0_84] : memref<50x32xf32, #tpu.memory_space<vmem>>, vector<1x32xf32>
    %c28_85 = arith.constant 28 : index
    %c0_86 = arith.constant 0 : index
    %115 = vector.load %arg7[%c28_85, %c0_86] : memref<32x32xf32, #tpu.memory_space<vmem>>, vector<1x32xf32>
    tpu.vector_store %arg7[%c28_85, %c0_86], %114 {strides = array<i32>} : memref<32x32xf32, #tpu.memory_space<vmem>>, vector<1x32xf32>,
    %c29 = arith.constant 29 : index
    %116 = memref.load %arg1[%c29] : memref<32xi32, #tpu.memory_space<smem>>
    %117 = arith.index_cast %116 : i32 to index
    %c0_87 = arith.constant 0 : index
    %118 = vector.load %arg2[%117, %c0_87] : memref<50x32xf32, #tpu.memory_space<vmem>>, vector<1x32xf32>
    %c29_88 = arith.constant 29 : index
    %c0_89 = arith.constant 0 : index
    %119 = vector.load %arg7[%c29_88, %c0_89] : memref<32x32xf32, #tpu.memory_space<vmem>>, vector<1x32xf32>
    tpu.vector_store %arg7[%c29_88, %c0_89], %118 {strides = array<i32>} : memref<32x32xf32, #tpu.memory_space<vmem>>, vector<1x32xf32>,
    %c30 = arith.constant 30 : index
    %120 = memref.load %arg1[%c30] : memref<32xi32, #tpu.memory_space<smem>>
    %121 = arith.index_cast %120 : i32 to index
    %c0_90 = arith.constant 0 : index
    %122 = vector.load %arg2[%121, %c0_90] : memref<50x32xf32, #tpu.memory_space<vmem>>, vector<1x32xf32>
    %c30_91 = arith.constant 30 : index
    %c0_92 = arith.constant 0 : index
    %123 = vector.load %arg7[%c30_91, %c0_92] : memref<32x32xf32, #tpu.memory_space<vmem>>, vector<1x32xf32>
    tpu.vector_store %arg7[%c30_91, %c0_92], %122 {strides = array<i32>} : memref<32x32xf32, #tpu.memory_space<vmem>>, vector<1x32xf32>,
    %c31 = arith.constant 31 : index
    %124 = memref.load %arg1[%c31] : memref<32xi32, #tpu.memory_space<smem>>
    %125 = arith.index_cast %124 : i32 to index
    %c0_93 = arith.constant 0 : index
    %126 = vector.load %arg2[%125, %c0_93] : memref<50x32xf32, #tpu.memory_space<vmem>>, vector<1x32xf32>
    %c31_94 = arith.constant 31 : index
    %c0_95 = arith.constant 0 : index
    %127 = vector.load %arg7[%c31_94, %c0_95] : memref<32x32xf32, #tpu.memory_space<vmem>>, vector<1x32xf32>
    tpu.vector_store %arg7[%c31_94, %c0_95], %126 {strides = array<i32>} : memref<32x32xf32, #tpu.memory_space<vmem>>, vector<1x32xf32>,
    %c0_96 = arith.constant 0 : index
    %c0_97 = arith.constant 0 : index
    %128 = vector.load %arg7[%c0_96, %c0_97] : memref<32x32xf32, #tpu.memory_space<vmem>>, vector<32x32xf32>
    %c31_i32 = arith.constant 31 : i32
    %129 = tpu.dynamic_rotate %128 by %c31_i32 dim 0 : vector<32x32xf32>, i32 -> vector<32x32xf32>
    %c30_i32 = arith.constant 30 : i32
    %130 = tpu.dynamic_rotate %128 by %c30_i32 dim 0 : vector<32x32xf32>, i32 -> vector<32x32xf32>
    %c29_i32 = arith.constant 29 : i32
    %131 = tpu.dynamic_rotate %128 by %c29_i32 dim 0 : vector<32x32xf32>, i32 -> vector<32x32xf32>
    %132 = tpu.concatenate %128, %129, %130, %131 in 1 : vector<32x32xf32>, vector<32x32xf32>, vector<32x32xf32>, vector<32x32xf32> -> vector<32x128xf32>
    %133 = arith.truncf %132 : vector<32x128xf32> to vector<32x128xbf16>
    %c0_98 = arith.constant 0 : index
    %c0_99 = arith.constant 0 : index
    %134 = vector.load %arg3[%c0_98, %c0_99] : memref<128x24xbf16, #tpu.memory_space<vmem>>, vector<128x24xbf16>
    %cst = arith.constant dense<0.000000e+00> : vector<32x24xf32>
    %135 = tpu.matmul %133, %134, %cst {dimension_numbers = #tpu.dot_dimension_numbers<[1], [0], [0], [1], [0, 0, 1, 1], [], []>} : vector<32x128xbf16>, vector<128x24xbf16>, vector<32x24xf32> -> vector<32x24xf32>
    %136 = vector.shape_cast %135 : vector<32x24xf32> to vector<2x16x24xf32>
    %c0_100 = arith.constant 0 : index
    %c0_101 = arith.constant 0 : index
    %137 = vector.load %arg4[%c0_100, %c0_101] : memref<16x24xf32, #tpu.memory_space<vmem>>, vector<16x24xf32>
    %138 = vector.shape_cast %137 : vector<16x24xf32> to vector<1x16x24xf32>
    %139 = vector.broadcast %138 : vector<1x16x24xf32> to vector<2x16x24xf32>
    %140 = arith.addf %136, %139 : vector<2x16x24xf32>
    %cst_102 = arith.constant 0.000000e+00 : f32
    %141 = vector.broadcast %cst_102 : f32 to vector<2x16x24xf32>
    %142 = arith.maximumf %140, %141 : vector<2x16x24xf32>
    %cst_103 = arith.constant dense<0xFF800000> : vector<2x24xf32>
    %143 = vector.multi_reduction <maximumf>, %142, %cst_103 [1] : vector<2x16x24xf32> to vector<2x24xf32>
    %cst_104 = arith.constant 1.000000e+00 : f32
    %144 = vector.broadcast %cst_104 : f32 to vector<2x1xf32>
    %145 = tpu.concatenate %143, %144 in 1 : vector<2x24xf32>, vector<2x1xf32> -> vector<2x25xf32>
    %146 = arith.truncf %145 : vector<2x25xf32> to vector<2x25xbf16>
    %c0_105 = arith.constant 0 : index
    %c0_106 = arith.constant 0 : index
    %147 = vector.load %arg5[%c0_105, %c0_106] : memref<25x4xbf16, #tpu.memory_space<vmem>>, vector<25x4xbf16>
    %cst_107 = arith.constant dense<0.000000e+00> : vector<2x4xf32>
    %148 = tpu.matmul %146, %147, %cst_107 {dimension_numbers = #tpu.dot_dimension_numbers<[1], [0], [0], [1], [0, 0, 1, 1], [], []>} : vector<2x25xbf16>, vector<25x4xbf16>, vector<2x4xf32> -> vector<2x4xf32>
    %c0_108 = arith.constant 0 : index
    %c0_109 = arith.constant 0 : index
    %149 = vector.load %arg6[%c0_108, %c0_109] : memref<2x4xf32, #tpu.memory_space<vmem>>, vector<2x4xf32>
    tpu.vector_store %arg6[%c0_108, %c0_109], %148 {strides = array<i32>} : memref<2x4xf32, #tpu.memory_space<vmem>>, vector<2x4xf32>,
    return
  }
  func.func @transform_0(%arg0: i32, %arg1: memref<32xi32, #tpu.memory_space<smem>>) -> (i32, i32) {
    %c0_i32 = arith.constant 0 : i32
    %c0_i32_0 = arith.constant 0 : i32
    %c0_i32_1 = arith.constant 0 : i32
    return %c0_i32, %c0_i32_0 : i32, i32
  }
  func.func @transform_1(%arg0: i32, %arg1: memref<32xi32, #tpu.memory_space<smem>>) -> (i32, i32) {
    %c0_i32 = arith.constant 0 : i32
    %c0_i32_0 = arith.constant 0 : i32
    %c0_i32_1 = arith.constant 0 : i32
    return %c0_i32, %c0_i32_0 : i32, i32
  }
  func.func @transform_2(%arg0: i32, %arg1: memref<32xi32, #tpu.memory_space<smem>>) -> (i32, i32) {
    %c0_i32 = arith.constant 0 : i32
    %c0_i32_0 = arith.constant 0 : i32
    %c0_i32_1 = arith.constant 0 : i32
    return %c0_i32, %c0_i32_0 : i32, i32
  }
  func.func @transform_3(%arg0: i32, %arg1: memref<32xi32, #tpu.memory_space<smem>>) -> (i32, i32) {
    %c0_i32 = arith.constant 0 : i32
    %c0_i32_0 = arith.constant 0 : i32
    %c0_i32_1 = arith.constant 0 : i32
    return %c0_i32, %c0_i32_0 : i32, i32
  }
  func.func @transform_4(%arg0: i32, %arg1: memref<32xi32, #tpu.memory_space<smem>>) -> (i32, i32) {
    %c0_i32 = arith.constant 0 : i32
    %c0_i32_0 = arith.constant 0 : i32
    %c0_i32_1 = arith.constant 0 : i32
    return %c0_i32, %c0_i32_0 : i32, i32
  }
}

</mosaic_0001>

<bundles_post_ra>
// kernel: textcnn_forward.1
= control target key start
LH: loop header
LB: loop body
LE: loop exit
PB: predicated region body
PF: predicated region fallthrough
CT: control target
= control target key end

     0   :  { %s1012_s0 = inlined_call_operand.vmem [shape: s32[32], index: 0, kind: input, shape index: {}]   ;;  %s1013_s1 = inlined_call_operand.vmem [shape: f32[50,32], index: 1, kind: input, shape index: {}]   ;;  %s1014_s2 = inlined_call_operand.vmem [shape: bf16[128,24], index: 2, kind: input, shape index: {}]   ;;  %s1015_s3 = inlined_call_operand.vmem [shape: f32[16,24], index: 3, kind: input, shape index: {}]   ;;  %s1016_s4 = inlined_call_operand.vmem [shape: bf16[25,4], index: 4, kind: input, shape index: {}]   ;;  %s1017_s5 = inlined_call_operand.hbm [shape: f32[2,4], index: 5, kind: output, shape index: {}]  }
   0x1   :  { %s10_s20 = sshll.u32 %s1012_s0, 4  ;;  %s11_s20 = int_to_ptr.vmem [resolvable:$true] %s10_s20 }
   0x2   :  { %s647_s21 = scalar_lea.vmem %s11_s20, 16  ;;  %p652_p1 = scmp.lt.s32.totalorder %s11_s20, %s11_s20 }
   0x3   :  { %p648_p0 = scmp.ne.s32.totalorder %s11_s20, %s647_s21  ;;  %p653_p2 = scmp.lt.s32.totalorder %s647_s21, %s647_s21 }
   0x5   :  { %p654_p3 = por %p653_p2, %p652_p1 }
   0x7   :  { %p655_p4 = pnand %p654_p3, %p648_p0 }
   0x9   :  { %658 = shalt.err (!%p655_p4)  }
   0xa   :  { %s685_s22 = smov [#allocation4]  }
   0xb   :  { %13 = dma.vmem_to_smem %s11_s20, 16, %s685_s22, [#allocation3] }
   0xc   :  { %681 = dma.done.wait [#allocation3], 16 }
   0xd   :  { %682 = vsyncadd [#allocation3], 4294967280 }
   0xe   :  { %15 = sfence }
   0xf   :  { %s26_s23 = sld [smem:[#allocation4]]  ;;  %s516_s24 = sld [smem:[#allocation4 + $0x1]]  ;;  %v637_v0 = vld [vmem:[%s1014_s2] sm:$0xff]   ;;  %v638_v1 = vld [vmem:[%s1014_s2 + $0x8] sm:$0xff]   ;;  %vm29_vm0 = vcmask 253952   ;;  %v639_v2 = vld [vmem:[%s1014_s2 + $0x10] sm:$0xff]   ;;  %v163_v22 = vlaneseq }
  0x10   :  { %s517_s0 = sld [smem:[#allocation4 + $0x2]]  ;;  %s518_s27 = sld [smem:[#allocation4 + $0x3]]  ;;  %571 = vmatprep.subr.bf16.mxu0 %v637_v0  ;;  %v640_v11 = vld [vmem:[%s1014_s2 + $0x18] sm:$0xff]   ;;  %v641_v16 = vld [vmem:[%s1014_s2 + $0x20] sm:$0xff]   ;;  %v642_v32 = vld [vmem:[%s1014_s2 + $0x28] sm:$0xff]  }
  0x11   :  { %s729_s28 = sld [smem:[#allocation4 + $0x4]]  ;;  %s731_s29 = sld [smem:[#allocation4 + $0x5]]  ;;  %572 = vmatpush3.bf16.msra.mxu0 %v637_v0  ;;  %v875_v30 = vshrl.u32 %v163_v22, 7 }
  0x12   :  { %s736_s7 = sld [smem:[#allocation4 + $0x6]]  ;;  %s738_s8 = sld [smem:[#allocation4 + $0x7]]  ;;  %573 = vmatprep.subr.bf16.mxu0 %v638_v1 }
  0x13   :  { %s740_s9 = sld [smem:[#allocation4 + $0x8]]  ;;  %s742_s10 = sld [smem:[#allocation4 + $0x9]] }
  0x14   :  { %s744_s11 = sld [smem:[#allocation4 + $0xa]]  ;;  %s746_s12 = sld [smem:[#allocation4 + $0xb]] }
  0x15   :  { %s27_s17 = scalar_lea.vmem %s1013_s1, %s26_s23  ;;  %s32_s20 = scalar_lea.vmem %s1013_s1, %s516_s24  ;;  %574 = vmatpush3.bf16.msra.mxu0 %v638_v1 }
  0x16   :  { %v28_v3 = vld [vmem:[%s27_s17] sm:$0x1]  ;;  %s36_s25 = scalar_lea.vmem %s1013_s1, %s517_s0  ;;  %s40_s6 = scalar_lea.vmem %s1013_s1, %s518_s27  ;;  %575 = vmatprep.subr.bf16.mxu0 %v639_v2 }
  0x17   :  { %v33_v4 = vld [vmem:[%s32_s20] sm:$0x1]  ;;  %30 = vst.msk [vmem:[#allocation2] sm:$0x1] %vm29_vm0, %v28_v3  ;;  %s44_s13 = scalar_lea.vmem %s1013_s1, %s729_s28  ;;  %s48_s0 = scalar_lea.vmem %s1013_s1, %s731_s29 }
  0x18   :  { %34 = vst.msk [vmem:[#allocation2 + $0x1] sm:$0x1] %vm29_vm0, %v33_v4  ;;  %v37_v5 = vld [vmem:[%s36_s25] sm:$0x1]  ;;  %s52_s17 = scalar_lea.vmem %s1013_s1, %s736_s7  ;;  %s56_s28 = scalar_lea.vmem %s1013_s1, %s738_s8 }
  0x19   :  { %v41_v6 = vld [vmem:[%s40_s6] sm:$0x1]  ;;  %38 = vst.msk [vmem:[#allocation2 + $0x2] sm:$0x1] %vm29_vm0, %v37_v5  ;;  %s60_s21 = scalar_lea.vmem %s1013_s1, %s740_s9  ;;  %s64_s26 = scalar_lea.vmem %s1013_s1, %s742_s10  ;;  %576 = vmatpush3.bf16.msra.mxu0 %v639_v2 }
  0x1a   :  { %42 = vst.msk [vmem:[#allocation2 + $0x3] sm:$0x1] %vm29_vm0, %v41_v6  ;;  %v45_v7 = vld [vmem:[%s44_s13] sm:$0x1]  ;;  %s68_s23 = scalar_lea.vmem %s1013_s1, %s744_s11  ;;  %s72_s13 = scalar_lea.vmem %s1013_s1, %s746_s12  ;;  %577 = vmatprep.subr.bf16.mxu0 %v640_v11 }
  0x1b   :  { %v49_v8 = vld [vmem:[%s48_s0] sm:$0x1]  ;;  %46 = vst.msk [vmem:[#allocation2 + $0x4] sm:$0x1] %vm29_vm0, %v45_v7  ;;  %s527_s10 = sld [smem:[#allocation4 + $0xc]]  ;;  %s528_s14 = sld [smem:[#allocation4 + $0xd]] }
  0x1c   :  { %50 = vst.msk [vmem:[#allocation2 + $0x5] sm:$0x1] %vm29_vm0, %v49_v8  ;;  %v53_v9 = vld [vmem:[%s52_s17] sm:$0x1]  ;;  %s529_s15 = sld [smem:[#allocation4 + $0xe]]  ;;  %s530_s11 = sld [smem:[#allocation4 + $0xf]] }
  0x1d   :  { %v57_v10 = vld [vmem:[%s56_s28] sm:$0x1]  ;;  %54 = vst.msk [vmem:[#allocation2 + $0x6] sm:$0x1] %vm29_vm0, %v53_v9  ;;  %s531_s0 = sld [smem:[#allocation4 + $0x10]]  ;;  %s532_s12 = sld [smem:[#allocation4 + $0x11]]  ;;  %578 = vmatpush3.bf16.msra.mxu0 %v640_v11 }
  0x1e   :  { %58 = vst.msk [vmem:[#allocation2 + $0x7] sm:$0x1] %vm29_vm0, %v57_v10  ;;  %v61_v12 = vld [vmem:[%s60_s21] sm:$0x1]  ;;  %s533_s17 = sld [smem:[#allocation4 + $0x12]]  ;;  %s813_s18 = sld [smem:[#allocation4 + $0x13]]  ;;  %579 = vmatprep.subr.bf16.mxu0 %v641_v16 }
  0x1f   :  { %v65_v13 = vld [vmem:[%s64_s26] sm:$0x1]  ;;  %62 = vst.msk [vmem:[#allocation2 + $0x8] sm:$0x1] %vm29_vm0, %v61_v12  ;;  %s815_s19 = sld [smem:[#allocation4 + $0x14]]  ;;  %s817_s28 = sld [smem:[#allocation4 + $0x15]] }
  0x20   :  { %66 = vst.msk [vmem:[#allocation2 + $0x9] sm:$0x1] %vm29_vm0, %v65_v13  ;;  %v69_v14 = vld [vmem:[%s68_s23] sm:$0x1]  ;;  %s819_s29 = sld [smem:[#allocation4 + $0x16]]  ;;  %s824_s25 = sld [smem:[#allocation4 + $0x17]] }
  0x21   :  { %v73_v15 = vld [vmem:[%s72_s13] sm:$0x1]  ;;  %70 = vst.msk [vmem:[#allocation2 + $0xa] sm:$0x1] %vm29_vm0, %v69_v14  ;;  %s76_s22 = scalar_lea.vmem %s1013_s1, %s527_s10  ;;  %s80_s7 = scalar_lea.vmem %s1013_s1, %s528_s14  ;;  %580 = vmatpush3.bf16.msra.mxu0 %v641_v16 }
  0x22   :  { %74 = vst.msk [vmem:[#allocation2 + $0xb] sm:$0x1] %vm29_vm0, %v73_v15  ;;  %v77_v17 = vld [vmem:[%s76_s22] sm:$0x1]  ;;  %s84_s23 = scalar_lea.vmem %s1013_s1, %s529_s15  ;;  %s88_s13 = scalar_lea.vmem %s1013_s1, %s530_s11  ;;  %581 = vmatprep.subr.bf16.mxu0 %v642_v32 }
  0x23   :  { %78 = vst.msk [vmem:[#allocation2 + $0xc] sm:$0x1] %vm29_vm0, %v77_v17  ;;  %v81_v18 = vld [vmem:[%s80_s7] sm:$0x1]  ;;  %s92_s16 = scalar_lea.vmem %s1013_s1, %s531_s0  ;;  %s96_s20 = scalar_lea.vmem %s1013_s1, %s532_s12 }
  0x24   :  { %v85_v19 = vld [vmem:[%s84_s23] sm:$0x1]  ;;  %82 = vst.msk [vmem:[#allocation2 + $0xd] sm:$0x1] %vm29_vm0, %v81_v18  ;;  %s100_s11 = scalar_lea.vmem %s1013_s1, %s533_s17  ;;  %s104_s30 = scalar_lea.vmem %s1013_s1, %s813_s18 }
  0x25   :  { %86 = vst.msk [vmem:[#allocation2 + $0xe] sm:$0x1] %vm29_vm0, %v85_v19  ;;  %v89_v20 = vld [vmem:[%s88_s13] sm:$0x1]  ;;  %s108_s12 = scalar_lea.vmem %s1013_s1, %s815_s19  ;;  %s112_s23 = scalar_lea.vmem %s1013_s1, %s817_s28  ;;  %582 = vmatpush3.bf16.msra.mxu0 %v642_v32 }
  0x26   :  { %v93_v21 = vld [vmem:[%s92_s16] sm:$0x1]  ;;  %90 = vst.msk [vmem:[#allocation2 + $0xf] sm:$0x1] %vm29_vm0, %v89_v20  ;;  %s116_s13 = scalar_lea.vmem %s1013_s1, %s819_s29  ;;  %s120_s10 = scalar_lea.vmem %s1013_s1, %s824_s25 }
  0x27   :  { %94 = vst.msk [vmem:[#allocation2 + $0x10] sm:$0x1] %vm29_vm0, %v93_v21  ;;  %v97_v23 = vld [vmem:[%s96_s20] sm:$0x1]  ;;  %s539_s28 = sld [smem:[#allocation4 + $0x18]]  ;;  %s540_s29 = sld [smem:[#allocation4 + $0x19]] }
  0x28   :  { %v101_v24 = vld [vmem:[%s100_s11] sm:$0x1]  ;;  %98 = vst.msk [vmem:[#allocation2 + $0x11] sm:$0x1] %vm29_vm0, %v97_v23  ;;  %s541_s27 = sld [smem:[#allocation4 + $0x1a]]  ;;  %s883_s15 = sld [smem:[#allocation4 + $0x1b]] }
  0x29   :  { %102 = vst.msk [vmem:[#allocation2 + $0x12] sm:$0x1] %vm29_vm0, %v101_v24  ;;  %v105_v25 = vld [vmem:[%s104_s30] sm:$0x1]  ;;  %s885_s25 = sld [smem:[#allocation4 + $0x1c]]  ;;  %s887_s20 = sld [smem:[#allocation4 + $0x1d]] }
  0x2a   :  { %v109_v26 = vld [vmem:[%s108_s12] sm:$0x1]  ;;  %106 = vst.msk [vmem:[#allocation2 + $0x13] sm:$0x1] %vm29_vm0, %v105_v25  ;;  %s889_s21 = sld [smem:[#allocation4 + $0x1e]]  ;;  %s893_s22 = sld [smem:[#allocation4 + $0x1f]] }
  0x2b   :  { %110 = vst.msk [vmem:[#allocation2 + $0x14] sm:$0x1] %vm29_vm0, %v109_v26  ;;  %v113_v27 = vld [vmem:[%s112_s23] sm:$0x1] }
  0x2c   :  { %v117_v28 = vld [vmem:[%s116_s13] sm:$0x1]  ;;  %114 = vst.msk [vmem:[#allocation2 + $0x15] sm:$0x1] %vm29_vm0, %v113_v27 }
  0x2d   :  { %118 = vst.msk [vmem:[#allocation2 + $0x16] sm:$0x1] %vm29_vm0, %v117_v28  ;;  %v121_v29 = vld [vmem:[%s120_s10] sm:$0x1]  ;;  %v891_v33 = vld [vmem:[#allocation2 + $0x8] sm:$0xff] }
  0x2e   :  { %122 = vst.msk [vmem:[#allocation2 + $0x17] sm:$0x1] %vm29_vm0, %v121_v29  ;;  %v878_v31 = vld [vmem:[#allocation2] sm:$0xff] }
  0x2f   :  { %16 = vsyncpa [#allocation6], 0  ;;  %v170_v34 = vrot.slane %v878_v31, 2  ;;  %v171_v35 = vrot.slane %v891_v33, 2  ;;  %v159_v36 = vrot.slane %v878_v31, 1  ;;  %v160_v37 = vrot.slane %v891_v33, 1  ;;  %s124_s26 = scalar_lea.vmem %s1013_s1, %s539_s28  ;;  %s128_s8 = scalar_lea.vmem %s1013_s1, %s540_s29 }
  0x30   :  { %vm174_vm1 = vcmp.lt.s32.totalorder %v875_v30, 6  ;;  %vm165_vm2 = vcmp.lt.s32.totalorder %v875_v30, 7  ;;  %v125_v38 = vld [vmem:[%s124_s26] sm:$0x1]  ;;  %s132_s6 = scalar_lea.vmem %s1013_s1, %s541_s27  ;;  %s136_s9 = scalar_lea.vmem %s1013_s1, %s883_s15  ;;  %v643_v55 = vld [vmem:[%s1014_s2 + $0x30] sm:$0xff]   ;;  %v644_v56 = vld [vmem:[%s1014_s2 + $0x38] sm:$0xff]  }
  0x31   :  { %126 = vst.msk [vmem:[#allocation2 + $0x18] sm:$0x1] %vm29_vm0, %v125_v38  ;;  %v129_v40 = vld [vmem:[%s128_s8] sm:$0x1]  ;;  %s140_s19 = scalar_lea.vmem %s1013_s1, %s885_s25  ;;  %v177_v43 = vsel %vm174_vm1, %v170_v34, %v171_v35  ;;  %v168_v45 = vsel %vm165_vm2, %v159_v36, %v160_v37  ;;  %s144_s29 = scalar_lea.vmem %s1013_s1, %s887_s20  ;;  %583 = vmatprep.subr.bf16.mxu0 %v643_v55  ;;  %v179_v57 = vrot.slane %v878_v31, 3  ;;  %v180_v59 = vrot.slane %v891_v33, 3 }
  0x32   :  { %v133_v41 = vld [vmem:[%s132_s6] sm:$0x1]  ;;  %130 = vst.msk [vmem:[#allocation2 + $0x19] sm:$0x1] %vm29_vm0, %v129_v40  ;;  %s148_s14 = scalar_lea.vmem %s1013_s1, %s889_s21  ;;  %s152_s11 = scalar_lea.vmem %s1013_s1, %s893_s22  ;;  %584 = vmatpush3.bf16.msra.mxu0 %v643_v55  ;;  %vm183_vm3 = vcmp.lt.s32.totalorder %v875_v30, 5  ;;  %vm236_vm4 = vcmask 261120  }
  0x33   :  { %134 = vst.msk [vmem:[#allocation2 + $0x1a] sm:$0x1] %vm29_vm0, %v133_v41  ;;  %v137_v46 = vld [vmem:[%s136_s9] sm:$0x1]  ;;  %s686_s1 = smov 64   ;;  %s687_s22 = smov 32   ;;  %585 = vmatprep.subr.bf16.mxu0 %v644_v56  ;;  %v186_v1 = vsel %vm183_vm3, %v179_v57, %v180_v59 }
  0x34   :  { %v141_v47 = vld [vmem:[%s140_s19] sm:$0x1]  ;;  %138 = vst.msk [vmem:[#allocation2 + $0x1b] sm:$0x1] %vm29_vm0, %v137_v46  ;;  %s688_s2 = smov 96   ;;  %vm241_vm5 = vcmask 523264  }
  0x35   :  { %v910_v39 = vld [vmem:[#allocation2 + $0x10] sm:$0xff]  ;;  %142 = vst.msk [vmem:[#allocation2 + $0x1c] sm:$0x1] %vm29_vm0, %v141_v47  ;;  %v145_v48 = vld [vmem:[%s144_s29] sm:$0x1]  ;;  %vm246_vm6 = vcmask 785408  }
  0x36   :  { %v172_v42 = vrot.slane %v910_v39, 2  ;;  %v161_v44 = vrot.slane %v910_v39, 1  ;;  %v149_v49 = vld [vmem:[%s148_s14] sm:$0x1]  ;;  %146 = vst.msk [vmem:[#allocation2 + $0x1d] sm:$0x1] %vm29_vm0, %v145_v48  ;;  %586 = vmatpush3.bf16.msra.mxu0 %v644_v56 }
  0x37   :  { %150 = vst.msk [vmem:[#allocation2 + $0x1e] sm:$0x1] %vm29_vm0, %v149_v49  ;;  %v153_v52 = vld [vmem:[%s152_s11] sm:$0x1]  ;;  %v181_v58 = vrot.slane %v910_v39, 3  ;;  %vm421_vm7 = vcmask 1043456  }
  0x38   :  { %v176_v50 = vsel %vm174_vm1, %v171_v35, %v172_v42  ;;  %v167_v51 = vsel %vm165_vm2, %v160_v37, %v161_v44  ;;  %154 = vst.msk [vmem:[#allocation2 + $0x1f] sm:$0x1] %vm29_vm0, %v153_v52  ;;  %v646_v46 = vld [vmem:[%s1016_s4 + $0x8] sm:$0x1f]   ;;  %vm422_vm8 = vcmask 1044480   ;;  %v690_v47 = vmov 65535  }
  0x39   :  { %v617_v53 = vpack.i.bf16 %v176_v50, %v177_v43  ;;  %v607_v54 = vpack.i.bf16 %v167_v51, %v168_v45  ;;  %v185_v0 = vsel %vm183_vm3, %v180_v59, %v181_v58  ;;  %v689_v45 = vmov 0.0   ;;  %v366_v51 = vld [vmem:[%s1015_s3] sm:$0xff] }
  0x3a   :  { %v627_v11 = vpack.i.bf16 %v185_v0, %v186_v1  ;;  %591 = vmatprep.subr.bf16.mxu1 %v689_v45  ;;  %v423_v48 = vsel %vm421_vm7, 4294967295, %v690_v47  ;;  %vm691_vm9 = vmmov 0   ;;  %vm376_vm10 = vcmask 195584  }
  0x3b   :  { %618 = vrot.lane.b32.xlu1 %v617_v53, %s686_s1  ;;  %608 = vrot.lane.b32.xlu0 %v607_v54, %s687_s22  ;;  %v424_v49 = vsel %vm422_vm8, %v423_v48, 0  ;;  %v367_v53 = vld [vmem:[%s1015_s3 + $0x8] sm:$0xff]  ;;  %vm397_vm11 = vcmask 1041409   ;;  %vm417_vm12 = vcmask 203776   ;;  %s692_s3 = smov [#allocation5]   ;;  %vm468_vm13 = vcmask 25600  }
  0x3c   :  { %v426_v50 = vand.u32 %v646_v46, %v424_v49  ;;  %595 = vmatprep.mubr.msk.bf16.mxu1 %vm691_vm9, %v689_v45 }
  0x3f   :  { %v158_v60 = vld [vmem:[#allocation2 + $0x18] sm:$0xff] }
  0x40   :  { %v173_v61 = vrot.slane %v158_v60, 2  ;;  %v162_v62 = vrot.slane %v158_v60, 1  ;;  %v182_v63 = vrot.slane %v158_v60, 3 }
  0x42   :  { %v175_v2 = vsel %vm174_vm1, %v172_v42, %v173_v61  ;;  %v178_v3 = vsel %vm174_vm1, %v173_v61, %v170_v34  ;;  %v166_v4 = vsel %vm165_vm2, %v161_v44, %v162_v62  ;;  %v169_v5 = vsel %vm165_vm2, %v162_v62, %v159_v36  ;;  %v645_v44 = vld [vmem:[%s1016_s4] sm:$0xff]   ;;  %s476_s4 = sshll.u32 %s692_s3, 4  ;;  %s477_s4 = int_to_ptr.vmem [resolvable:$true] %s476_s4 }
  0x43   :  { %v622_v6 = vpack.i.bf16 %v178_v3, %v175_v2  ;;  %v612_v7 = vpack.i.bf16 %v169_v5, %v166_v4  ;;  %v184_v8 = vsel %vm183_vm3, %v181_v58, %v182_v63  ;;  %v187_v9 = vsel %vm183_vm3, %v182_v63, %v179_v57  ;;  %592 = vmatpush3.bf16.msra.mxu1 %v645_v44  ;;  %s659_s9 = scalar_lea.vmem %s477_s4, 32  ;;  %p664_p6 = scmp.lt.s32.totalorder %s477_s4, %s477_s4 }
  0x44   :  { %v632_v10 = vpack.i.bf16 %v187_v9, %v184_v8  ;;  %593 = vmatprep.subr.bf16.mxu1 %v689_v45  ;;  %p660_p5 = scmp.ne.s32.totalorder %s477_s4, %s659_s9  ;;  %p665_p7 = scmp.lt.s32.totalorder %s659_s9, %s659_s9 }
  0x45   :  { %623 = vrot.lane.b32.xlu1 %v622_v6, %s686_s1  ;;  %613 = vrot.lane.b32.xlu0 %v612_v7, %s687_s22 }
  0x46   :  { %p666_p8 = por %p665_p7, %p664_p6 }
  0x47   :  { %594 = vmatpush3.bf16.msra.mxu1 %v426_v50 }
  0x48   :  { %p667_p9 = pnand %p666_p8, %p660_p5 }
  0x49   :  { %633 = vrot.lane.b32.xlu1 %v632_v10, %s688_s2  ;;  %628 = vrot.lane.b32.xlu0 %v627_v11, %s688_s2 }
  0xad   :  { %v619_v12 = vpop.permute.xlu1 %618  ;;  %v609_v13 = vpop.permute.xlu0 %608 }
  0xae   :  { %v611_v14 = vunpack.i.h.bf16 %v609_v13  ;;  %v610_v15 = vunpack.i.l.bf16 %v609_v13  ;;  %v621_v20 = vunpack.i.h.bf16 %v619_v12  ;;  %v620_v21 = vunpack.i.l.bf16 %v619_v12 }
  0xb0   :  { %v237_v26 = vsel %vm236_vm4, %v878_v31, %v610_v15  ;;  %v238_v27 = vsel %vm236_vm4, %v891_v33, %v611_v14 }
  0xb1   :  { %v242_v36 = vsel %vm241_vm5, %v237_v26, %v620_v21  ;;  %v243_v37 = vsel %vm241_vm5, %v238_v27, %v621_v20 }
  0xb7   :  { %v624_v16 = vpop.permute.xlu1 %623  ;;  %v614_v17 = vpop.permute.xlu0 %613 }
  0xb8   :  { %v616_v18 = vunpack.i.h.bf16 %v614_v17  ;;  %v615_v19 = vunpack.i.l.bf16 %v614_v17  ;;  %v626_v22 = vunpack.i.h.bf16 %v624_v16  ;;  %v625_v23 = vunpack.i.l.bf16 %v624_v16 }
  0xba   :  { %v240_v24 = vsel %vm236_vm4, %v158_v60, %v616_v18  ;;  %v239_v25 = vsel %vm236_vm4, %v910_v39, %v615_v19 }
  0xbb   :  { %v634_v28 = vpop.permute.xlu1 %633  ;;  %v629_v29 = vpop.permute.xlu0 %628  ;;  %v244_v38 = vsel %vm241_vm5, %v239_v25, %v625_v23  ;;  %v245_v40 = vsel %vm241_vm5, %v240_v24, %v626_v22 }
  0xbc   :  { %v636_v30 = vunpack.i.h.bf16 %v634_v28  ;;  %v635_v32 = vunpack.i.l.bf16 %v634_v28  ;;  %v631_v34 = vunpack.i.h.bf16 %v629_v29  ;;  %v630_v35 = vunpack.i.l.bf16 %v629_v29 }
  0xbe   :  { %v247_v39 = vsel %vm246_vm6, %v242_v36, %v630_v35  ;;  %v248_v41 = vsel %vm246_vm6, %v243_v37, %v631_v34  ;;  %v249_v31 = vsel %vm246_vm6, %v244_v38, %v635_v32  ;;  %v250_v42 = vsel %vm246_vm6, %v245_v40, %v636_v30 }
  0xbf   :  { %v251_v33 = vpack.c.bf16 %v248_v41, %v247_v39  ;;  %v252_v43 = vpack.c.bf16 %v250_v42, %v249_v31 }
  0xc1   :  { %587 = vmatprep.mubr.bf16.mxu0 %v251_v33 }
  0xc2   :  { %588 = vmatmul.mubr.bf16.vlgmr.msra.gmra.mrb[0].mxu0 %v252_v43 }
 0x195   :  { %v589_v52 = vpop.f32.mrb[0].mxu0 }
 0x196   :  { %v370_v54 = vadd.f32 %v589_v52, %v366_v51  ;;  %v351_v55 = vpop.f32.mrb[1].mxu0 }
 0x197   :  { %v368_v56 = vadd.f32 %v366_v51, %v351_v55  ;;  %v590_v57 = vpop.f32.mrb[2].mxu0 }
 0x198   :  { %v374_v58 = vmax.f32 %v370_v54, 0.0  ;;  %v371_v59 = vadd.f32 %v590_v57, %v367_v53  ;;  %v354_v60 = vpop.f32.mrb[3].mxu0 }
 0x199   :  { %v372_v61 = vmax.f32 %v368_v56, 0.0  ;;  %v369_v62 = vadd.f32 %v367_v53, %v354_v60 }
 0x19a   :  { %v375_v63 = vmax.f32 %v371_v59, 0.0  ;;  %v386_v1 = vsel %vm376_vm10, %v374_v58, -inf }
 0x19b   :  { %v373_v0 = vmax.f32 %v369_v62, 0.0  ;;  %v377_v3 = vsel %vm376_vm10, %v372_v61, -inf }
 0x19c   :  { %v387_v2 = vsel %vm376_vm10, %v375_v63, -inf }
 0x19d   :  { %v388_v4 = vmax.f32 %v386_v1, %v387_v2  ;;  %v378_v5 = vsel %vm376_vm10, %v373_v0, -inf }
 0x19e   :  { %v379_v6 = vmax.f32 %v377_v3, %v378_v5 }
 0x19f   :  { %v389_v7 = vrot.slane %v388_v4, 4 }
 0x1a0   :  { %v380_v8 = vrot.slane %v379_v6, 4 }
 0x1a1   :  { %v390_v9 = vmax.f32 %v388_v4, %v389_v7 }
 0x1a2   :  { %v381_v10 = vmax.f32 %v379_v6, %v380_v8 }
 0x1a3   :  { %v391_v11 = vrot.slane %v390_v9, 2 }
 0x1a4   :  { %v382_v12 = vrot.slane %v381_v10, 2 }
 0x1a5   :  { %v392_v13 = vmax.f32 %v390_v9, %v391_v11 }
 0x1a6   :  { %v383_v14 = vmax.f32 %v381_v10, %v382_v12 }
 0x1a7   :  { %v393_v15 = vrot.slane %v392_v13, 1 }
 0x1a8   :  { %v384_v16 = vrot.slane %v383_v14, 1 }
 0x1a9   :  { %v394_v17 = vmax.f32 %v392_v13, %v393_v15 }
 0x1aa   :  { %v385_v18 = vmax.f32 %v383_v14, %v384_v16 }
 0x1ac   :  { %v398_v19 = vsel %vm397_vm11, %v394_v17, %v385_v18 }
 0x1ad   :  { %v400_v20 = vsel %vm376_vm10, %v398_v19, 1.0 }
 0x1ae   :  { %v401_v21 = vpack.c.bf16 %v400_v20, %v400_v20 }
 0x1b0   :  { %596 = vmatmul.mubr.msk.bf16.vlgmr.msra.gmra.mrb[0].mxu1 %vm417_vm12, %v401_v21 }
 0x283   :  { %v462_v22 = vpop.f32.mrb[0].mxu1 }
 0x284   :  { %469 = vst.msk [vmem:[#allocation5] sm:$0x3] %vm468_vm13, %v462_v22  ;;  %v597_v23 = vpop.f32.mrb[1].mxu1 }
 0x285   :  { %v465_v24 = vpop.f32.mrb[2].mxu1 }
 0x286   :  { %670 = shalt.err (!%p667_p9)
}
 0x287   :  { %s671_s19 = scalar_lea.hbm %s1017_s5, 32 }
 0x288   :  { %p672_p10 = scmp.ne.s32.totalorder %s1017_s5, %s671_s19  ;;  %p675_p11 = scmp.lt.u32.totalorder %s671_s19, %s1017_s5 }
 0x28a   :  { %p677_p12 = pnand %p675_p11, %p672_p10 }
 0x28c   :  { %680 = shalt.err (!%p677_p12)
}
 0x28d   :  { %479 = dma.vmem_to_hbm [thread:$0]  %s477_s4, 32, %s1017_s5, [#allocation6]   ;;  %v598_v25 = vpop.f32.mrb[3].mxu1 }
 0x28e   :  { %683 = dma.done.wait [#allocation6], 32  }
 0x28f   :  { %684 = vsyncadd [#allocation6], 4294967264 }
 0x290   :  { %483 = vsyncpa [#allocation6], 1 }

</bundles_post_ra>
